<compile_context>
chip_gen: v5e
topology: v5e:2x2
jax: 0.10.0
libtpu: 0.0.40
codegen_flags: <defaults>
</compile_context>

<pallas_src>
import functools

import jax
import jax.numpy as jnp
from jax.experimental import pallas as pl
from jax.experimental.pallas import tpu as pltpu

NUM_EMBEDDINGS = 32
LATENT_DIM = 10


# ----------------------------------------------------------------------------
# Kernel
# ----------------------------------------------------------------------------
def _vq_kernel(z_ref, e_ref, idx_ref):
    # z_ref:   (D+1, TN)  augmented z tile: rows 0..D-1 = z^T, row D = ones (TN on lanes)
    # e_ref:   (K, D+1)   augmented codebook: [-2*E | ||e||^2]   (resident every step)
    # idx_ref: (1, TN)    lane-dense argmin indices for this tile
    score = jnp.dot(e_ref[...], z_ref[...],
                    preferred_element_type=jnp.float32)             # (K, TN) MXU
    k = score.shape[0]
    min_val = jnp.min(score, axis=0, keepdims=True)                  # (1, TN)
    iota = jax.lax.broadcasted_iota(jnp.int32, score.shape, 0)       # (K, TN)
    # first-occurrence tie-break over the codebook (sublane) axis == torch.argmin
    idx = jnp.min(jnp.where(score == min_val, iota, k),
                  axis=0, keepdims=True)                             # (1, TN)
    idx_ref[...] = idx.astype(jnp.int32)


# ----------------------------------------------------------------------------
# Wrapper
# ----------------------------------------------------------------------------
def _round_up(x, m):
    return ((x + m - 1) // m) * m


def _choose_tiling(n, max_tile_rows):
    """Pick (n_pad, tile): tile is a multiple of 128 (lane width), n_pad a multiple
    of tile, and the grid has >= 2 steps whenever the input allows it (so the
    'parallel' grid axis can shard across v7x's two TensorCores)."""
    max_tile_rows = max(128, (max_tile_rows // 128) * 128)
    n128 = _round_up(n, 128)
    if n128 <= 128:
        return n128, n128
    half = _round_up((n128 + 1) // 2, 128)
    tile = min(max_tile_rows, half)
    n_pad = _round_up(n128, tile)
    return n_pad, tile


def _prep_inputs(z_e, embedding_weight, tile_rows):
    d = z_e.shape[-1]
    k = embedding_weight.shape[0]
    z_flat = z_e.reshape(-1, d).astype(jnp.float32)
    n = z_flat.shape[0]
    n_pad, tile = _choose_tiling(n, tile_rows)

    # Augmented + transposed z: (D+1, n_pad), N on the lane axis.  One cheap extra
    # XLA pass over z; padded columns are zeros (their indices are sliced away).
    z_aug = jnp.concatenate(
        [z_flat, jnp.ones((n, 1), jnp.float32)], axis=1).T           # (D+1, n)
    if n_pad != n:
        z_aug = jnp.pad(z_aug, ((0, 0), (0, n_pad - n)))

    w = embedding_weight.astype(jnp.float32)
    e_aug = jnp.concatenate(
        [-2.0 * w, jnp.sum(w * w, axis=1, keepdims=True)], axis=1)   # (K, D+1)
    return z_aug, e_aug, n, n_pad, tile, d, k


@functools.partial(jax.jit, static_argnames=("tile_rows",))
def vector_quantizer_forward(z_e, embedding_weight, tile_rows=16384):
    """Nearest-codebook indices; shape = z_e.shape[:-1], dtype int32."""
    lead_shape = z_e.shape[:-1]
    z_aug, e_aug, n, n_pad, tile, d, k = _prep_inputs(
        z_e, embedding_weight, tile_rows)

    grid = (n_pad // tile,)
    idx = pl.pallas_call(
        _vq_kernel,
        out_shape=jax.ShapeDtypeStruct((1, n_pad), jnp.int32),
        grid_spec=pltpu.PrefetchScalarGridSpec(
            num_scalar_prefetch=0,
            grid=grid,
            in_specs=[
                pl.BlockSpec((d + 1, tile), lambda i: (0, i)),   # z_aug column tile
                pl.BlockSpec((k, d + 1), lambda i: (0, 0)),      # codebook (resident)
            ],
            out_specs=pl.BlockSpec((1, tile), lambda i: (0, i)),
        ),
        compiler_params=pltpu.CompilerParams(
            dimension_semantics=("parallel",)),
    )(z_aug, e_aug)

    return idx[0, :n].reshape(lead_shape)


# ----------------------------------------------------------------------------
# Reference & check
# ----------------------------------------------------------------------------
def _reference_distances(z_e, w):
    # Mirrors the PyTorch forward's distance expression exactly.
    return (jnp.sum(z_e ** 2, axis=-1, keepdims=True)
            + jnp.sum(w ** 2, axis=1)
            - 2.0 * jnp.matmul(z_e, w.T))


def _check(indices, z_e, w):
    d = _reference_distances(z_e, w)
    ref = jnp.argmin(d, axis=-1).astype(jnp.int32)
    exact = indices == ref
    # The fused-score formulation rounds differently than the reference, so allow
    # near-exact ties: the selected code's distance must equal the min distance
    # to within tolerance.
    d_sel = jnp.take_along_axis(d, indices[..., None], axis=-1)[..., 0]
    d_min = jnp.min(d, axis=-1)
    ok = exact | (d_sel <= d_min + 1e-5)
    assert bool(jnp.all(ok)), "kernel indices disagree with reference beyond tie tolerance"


if __name__ == "__main__":
    key = jax.random.PRNGKey(0)
    k_emb, k_z, k_z2 = jax.random.split(key, 3)

    # Deterministic "parameter init": uniform(-1/K, 1/K), same as the module.
    embedding_weight = jax.random.uniform(
        k_emb,
        (NUM_EMBEDDINGS, LATENT_DIM),
        minval=-1.0 / NUM_EMBEDDINGS,
        maxval=1.0 / NUM_EMBEDDINGS,
        dtype=jnp.float32,
    )

    # Small example input: batch=2, seq=8, latent_dim=10 (channel-last) -> single-tile grid.
    z_e = jax.random.normal(k_z, (2, 8, LATENT_DIM), dtype=jnp.float32)
    indices = jax.block_until_ready(vector_quantizer_forward(z_e, embedding_weight))
    assert indices.shape == z_e.shape[:-1], (indices.shape, z_e.shape)
    _check(indices, z_e, embedding_weight)

    # Second check exercising the multi-tile / megacore path (8192 rows -> 2 grid steps).
    z_big = jax.random.normal(k_z2, (4, 2048, LATENT_DIM), dtype=jnp.float32)
    idx_big = jax.block_until_ready(vector_quantizer_forward(z_big, embedding_weight))
    assert idx_big.shape == z_big.shape[:-1], (idx_big.shape, z_big.shape)
    _check(idx_big, z_big, embedding_weight)

    print("KERNEL_OK")
</pallas_src>

<mosaic_0001>
module attributes {stable_mosaic.version = 11 : i64} {
  func.func @_vq_kernel(%arg0: i32, %arg1: memref<11x128xf32, #tpu.memory_space<vmem>>, %arg2: memref<32x11xf32, #tpu.memory_space<vmem>>, %arg3: memref<1x128xi32, #tpu.memory_space<vmem>>) attributes {dimension_semantics = [#tpu.dimension_semantics<parallel>], iteration_bounds = array<i64: 1>, scalar_prefetch = 0 : i64, scratch_operands = 0 : i64, tpu.core_type = #tpu.core_type<tc>, window_params = [{transform_indices = @transform_0, window_bounds = array<i64: 11, 128>}, {pipeline_mode = #tpu.pipeline_mode<synchronous>, transform_indices = @transform_1, window_bounds = array<i64: 32, 11>}, {transform_indices = @transform_2, window_bounds = array<i64: 1, 128>}]} {
    %c0 = arith.constant 0 : index
    %c0_0 = arith.constant 0 : index
    %0 = vector.load %arg2[%c0, %c0_0] : memref<32x11xf32, #tpu.memory_space<vmem>>, vector<32x11xf32>
    %c0_1 = arith.constant 0 : index
    %c0_2 = arith.constant 0 : index
    %1 = vector.load %arg1[%c0_1, %c0_2] : memref<11x128xf32, #tpu.memory_space<vmem>>, vector<11x128xf32>
    %cst = arith.constant dense<0.000000e+00> : vector<32x128xf32>
    %2 = tpu.matmul %0, %1, %cst {dimension_numbers = #tpu.dot_dimension_numbers<[1], [0], [0], [1], [0, 0, 1, 1], [], []>} : vector<32x11xf32>, vector<11x128xf32>, vector<32x128xf32> -> vector<32x128xf32>
    %cst_3 = arith.constant dense<0x7F800000> : vector<128xf32>
    %3 = vector.multi_reduction <minimumf>, %2, %cst_3 [0] : vector<32x128xf32> to vector<128xf32>
    %4 = vector.shape_cast %3 : vector<128xf32> to vector<1x128xf32>
    %5 = tpu.iota {dimensions = array<i32: 0>} : vector<32x128xi32>
    %6 = vector.broadcast %4 : vector<1x128xf32> to vector<32x128xf32>
    %7 = arith.cmpf oeq, %2, %6 : vector<32x128xf32>
    %c32_i32 = arith.constant 32 : i32
    %8 = vector.broadcast %c32_i32 : i32 to vector<32x128xi32>
    %9 = arith.select %7, %5, %8 : vector<32x128xi1>, vector<32x128xi32>
    %cst_4 = arith.constant dense<2147483647> : vector<128xi32>
    %10 = vector.multi_reduction <minsi>, %9, %cst_4 [0] : vector<32x128xi32> to vector<128xi32>
    %11 = vector.shape_cast %10 : vector<128xi32> to vector<1x128xi32>
    %c0_5 = arith.constant 0 : index
    %c0_6 = arith.constant 0 : index
    %12 = vector.load %arg3[%c0_5, %c0_6] : memref<1x128xi32, #tpu.memory_space<vmem>>, vector<1x128xi32>
    tpu.vector_store %arg3[%c0_5, %c0_6], %11 {strides = array<i32>} : memref<1x128xi32, #tpu.memory_space<vmem>>, vector<1x128xi32>,
    return
  }
  func.func @transform_0(%arg0: i32) -> (i32, i32) {
    %c0_i32 = arith.constant 0 : i32
    %c0_i32_0 = arith.constant 0 : i32
    return %c0_i32, %arg0 : i32, i32
  }
  func.func @transform_1(%arg0: i32) -> (i32, i32) {
    %c0_i32 = arith.constant 0 : i32
    %c0_i32_0 = arith.constant 0 : i32
    %c0_i32_1 = arith.constant 0 : i32
    return %c0_i32, %c0_i32_0 : i32, i32
  }
  func.func @transform_2(%arg0: i32) -> (i32, i32) {
    %c0_i32 = arith.constant 0 : i32
    %c0_i32_0 = arith.constant 0 : i32
    return %c0_i32, %arg0 : i32, i32
  }
}

</mosaic_0001>

<bundles_post_ra>
// kernel: squeeze.1
= control target key start
LH: loop header
LB: loop body
LE: loop exit
PB: predicated region body
PF: predicated region fallthrough
CT: control target
= control target key end

     0   :  { %s80_s0 = inlined_call_operand.vmem [shape: s32[16], index: 0, kind: input, shape index: {}]   ;;  %s81_s1 = inlined_call_operand.hbm [shape: s32[2,8], index: 1, kind: output, shape index: {}]  }
   0x1   :  { %v5_v0 = vld [vmem:[%s80_s0] sm:$0x1] }
   0x2   :  { %2 = vsyncpa [#allocation1], 0  ;;  %6 = vst [vmem:[#allocation3] sm:$0x1] %v5_v0  ;;  %vm8_vm0 = vcmask 64512   ;;  %s62_s0 = smov 120  }
   0x3   :  { %s63_s8 = smov [#allocation0]   ;;  %s27_s1 = sshll.u32 %s81_s1, 4  ;;  %s28_s1 = int_to_ptr.hbm [resolvable:$true] %s27_s1 }
   0x4   :  { %s25_s9 = sshll.u32 %s63_s8, 4  ;;  %s26_s9 = int_to_ptr.vmem [resolvable:$true] %s25_s9 }
   0x9   :  { %v10_v1 = vld [vmem:[#allocation3] sm:$0x1]  }
   0xa   :  { %v7_v2 = vld [vmem:[#allocation3] sm:$0x1]   ;;  %11 = vrot.lane.b32.xlu0 %v10_v1, %s62_s0 }
   0xb   :  { %9 = vst.msk [vmem:[#allocation2] sm:$0x1] %vm8_vm0, %v7_v2  }
  0x7c   :  { %v12_v3 = vpop.permute.xlu0 %11  }
  0x7d   :  { %15 = vst.msk [vmem:[#allocation2 + $0x1] sm:$0x1] %vm8_vm0, %v12_v3  }
  0x84   :  { %v18_v4 = vld [vmem:[#allocation2] sm:$0x3] }
  0x85   :  { %21 = vst [vmem:[#allocation0] sm:$0x3] %v18_v4 }
  0x86   :  { %30 = dma.vmem_to_hbm [thread:$0]  %s26_s9, 32, %s28_s1, [#allocation1]  }
  0x87   :  { %60 = dma.done.wait [#allocation1], 32  }
  0x88   :  { %61 = vsyncadd [#allocation1], 4294967264 }
  0x89   :  { %33 = vsyncpa [#allocation1], 1 }

// kernel: vector_quantizer_forward.1
= control target key start
LH: loop header
LB: loop body
LE: loop exit
PB: predicated region body
PF: predicated region fallthrough
CT: control target
= control target key end

     0   :  { %vm30_vm0 = vcmask 1042432   ;;  %vm17_vm1 = vcmask 89088   ;;  %v72_v14 = vlaneseq  ;;  %s152_s0 = inlined_call_operand.vmem [shape: f32[11,128], index: 0, kind: input, shape index: {}]   ;;  %s153_s1 = inlined_call_operand.vmem [shape: f32[32,11], index: 1, kind: input, shape index: {}]   ;;  %s154_s2 = inlined_call_operand.vmem [shape: s32[1,128], index: 2, kind: output, shape index: {}]  }
   0x1   :  { %v16_v0 = vld [vmem:[%s152_s0 + $0x8] sm:$0x7]  ;;  %v15_v1 = vld [vmem:[%s152_s0] sm:$0xff]  ;;  %v13_v2 = vld [vmem:[%s153_s1 + $0x10] sm:$0xff] }
   0x2   :  { %111 = vmatpush.msk.msra.mxu2 %vm30_vm0, %v16_v0  ;;  %112 = vmatpush.msk.msra.mxu3 %vm30_vm0, %v16_v0  ;;  %v14_v3 = vld [vmem:[%s153_s1 + $0x18] sm:$0xff]  ;;  %v11_v4 = vld [vmem:[%s153_s1] sm:$0xff]  ;;  %v12_v5 = vld [vmem:[%s153_s1 + $0x8] sm:$0xff]  ;;  %v73_v17 = vshrl.u32 %v72_v14, 7 }
   0x3   :  { %105 = vmatpush.msk.msra.mxu0 %vm30_vm0, %v16_v0  ;;  %110 = vmatpush.msk.msra.mxu1 %vm30_vm0, %v16_v0 }
   0x4   :  { %114 = vmatpush.msra.mxu2 %v15_v1  ;;  %115 = vmatpush.msra.mxu3 %v15_v1  ;;  %v74_v20 = vadd.s32 8, %v73_v17  ;;  %v75_v21 = vadd.s32 16, %v73_v17  ;;  %v76_v22 = vadd.s32 24, %v73_v17 }
   0x5   :  { %108 = vmatmul.msk.f32.vlgmr.msra.gmra.mxu2 %vm17_vm1, %v13_v2  ;;  %109 = vmatmul.msk.f32.vlgmr.msra.gmra.mxu3 %vm17_vm1, %v14_v3 }
   0x6   :  { %49 = vmatpush.msra.mxu0 %v15_v1  ;;  %113 = vmatpush.msra.mxu1 %v15_v1 }
   0x7   :  { %106 = vmatmul.msk.f32.vlgmr.msra.gmra.mxu0 %vm17_vm1, %v11_v4  ;;  %107 = vmatmul.msk.f32.vlgmr.msra.gmra.mxu1 %vm17_vm1, %v12_v5 }
  0x84   :  { %v51_v6 = vpop.f32.mrf.mxu0  ;;  %v54_v7 = vpop.f32.mrf.mxu1 }
  0x85   :  { %v63_v8 = vmin.f32 %v51_v6, %v54_v7 }
  0x88   :  { %v57_v9 = vpop.f32.mrf.mxu2  ;;  %v60_v10 = vpop.f32.mrf.mxu3 }
  0x89   :  { %v64_v11 = vmin.f32 %v57_v9, %v60_v10 }
  0x8b   :  { %v65_v12 = vmin.f32 %v63_v8, %v64_v11 }
  0x8d   :  { %v66_v13 = vrot.slane %v65_v12, 4 }
  0x8f   :  { %v67_v15 = vmin.f32 %v65_v12, %v66_v13 }
  0x91   :  { %v68_v16 = vrot.slane %v67_v15, 2 }
  0x93   :  { %v69_v18 = vmin.f32 %v67_v15, %v68_v16 }
  0x95   :  { %v70_v19 = vrot.slane %v69_v18, 1 }
  0x97   :  { %v71_v23 = vmin.f32 %v69_v18, %v70_v19 }
  0x99   :  { %vm77_vm2 = vcmp.eq.f32.partialorder %v51_v6, %v71_v23  ;;  %vm78_vm3 = vcmp.eq.f32.partialorder %v54_v7, %v71_v23  ;;  %vm79_vm4 = vcmp.eq.f32.partialorder %v57_v9, %v71_v23  ;;  %vm80_vm5 = vcmp.eq.f32.partialorder %v60_v10, %v71_v23 }
  0x9a   :  { %v81_v24 = vsel %vm77_vm2, %v73_v17, 32  ;;  %v82_v25 = vsel %vm78_vm3, %v74_v20, 32  ;;  %v83_v26 = vsel %vm79_vm4, %v75_v21, 32  ;;  %v84_v27 = vsel %vm80_vm5, %v76_v22, 32 }
  0x9b   :  { %vm85_vm6 = vcmp.lt.s32.totalorder %v81_v24, %v82_v25  ;;  %vm87_vm7 = vcmp.lt.s32.totalorder %v83_v26, %v84_v27 }
  0x9c   :  { %v86_v28 = vsel %vm85_vm6, %v81_v24, %v82_v25  ;;  %v88_v29 = vsel %vm87_vm7, %v83_v26, %v84_v27 }
  0x9d   :  { %vm89_vm8 = vcmp.lt.s32.totalorder %v86_v28, %v88_v29 }
  0x9e   :  { %v90_v30 = vsel %vm89_vm8, %v86_v28, %v88_v29 }
  0x9f   :  { %v91_v31 = vrot.slane %v90_v30, 4 }
  0xa1   :  { %vm92_vm9 = vcmp.lt.s32.totalorder %v90_v30, %v91_v31 }
  0xa2   :  { %v93_v32 = vsel %vm92_vm9, %v90_v30, %v91_v31 }
  0xa3   :  { %v94_v33 = vrot.slane %v93_v32, 2 }
  0xa5   :  { %vm95_vm10 = vcmp.lt.s32.totalorder %v93_v32, %v94_v33 }
  0xa6   :  { %v96_v34 = vsel %vm95_vm10, %v93_v32, %v94_v33 }
  0xa7   :  { %v97_v35 = vrot.slane %v96_v34, 1 }
  0xa9   :  { %vm98_vm11 = vcmp.lt.s32.totalorder %v96_v34, %v97_v35 }
  0xaa   :  { %v99_v36 = vsel %vm98_vm11, %v96_v34, %v97_v35 }
  0xab   :  { %100 = vst [vmem:[%s154_s2] sm:$0x1] %v99_v36 }

</bundles_post_ra>
